<compile_context>
chip_gen: v7x
topology: tpu7x:2x2x1
jax: 0.10.0
libtpu: 0.0.40
codegen_flags: <defaults>
</compile_context>

<pallas_src>
import functools

import jax
import jax.numpy as jnp
from jax.experimental import pallas as pl
from jax.experimental.pallas import tpu as pltpu


HIDDEN = 20  # fixed by the nn.Module definition


def _round_up(x, m):
    return ((x + m - 1) // m) * m


def _vae_kernel(x_ref, eps_ref,
                w1_ref, b1_ref,
                w2_ref, b2_ref,      # fused [mu | logvar] head
                w3_ref, b3_ref,
                w4_ref, b4_ref,
                out_ref):            # packed [recon | mu | logvar]
    x = x_ref[...]
    zdim = eps_ref.shape[-1]

    # encode: h1 = relu(x @ W1 + b1)
    h1 = jnp.dot(x, w1_ref[...], preferred_element_type=jnp.float32) + b1_ref[...]
    h1 = jnp.maximum(h1, 0.0)

    # fused mu/logvar head: one (HIDDEN, 2*zdim) matmul, then static slices
    head = jnp.dot(h1, w2_ref[...], preferred_element_type=jnp.float32) + b2_ref[...]
    mu = head[:, :zdim]
    logvar = head[:, zdim:]

    # reparameterize (training mode): z = mu + eps * exp(0.5 * logvar)
    std = jnp.exp(0.5 * logvar)
    z = mu + eps_ref[...] * std

    # decode: h3 = relu(z @ W3 + b3); recon = h3 @ W4 + b4
    h3 = jnp.dot(z, w3_ref[...], preferred_element_type=jnp.float32) + b3_ref[...]
    h3 = jnp.maximum(h3, 0.0)
    recon = jnp.dot(h3, w4_ref[...], preferred_element_type=jnp.float32) + b4_ref[...]

    # one lane-dense packed write: [recon | mu | logvar]  (head is already mu|logvar)
    out_ref[...] = jnp.concatenate([recon, head], axis=-1)


@functools.partial(jax.jit, static_argnames=("tile_b",))
def vae_forward(x, eps, params, *, tile_b=256):
    """Runs the full VAE forward inside one gridded Pallas kernel.

    Args:
      x:      (B, input_dim) float32  (already flattened, as in x.view(-1, D))
      eps:    (B, zdim)      float32  standard-normal noise (torch.randn equiv.)
      params: dict of weights (in, out) and biases (1, out)
      tile_b: rows per grid step (multiple of 8); weights stay VMEM-resident
              across steps, activations are pipelined.
    Returns:
      (recon (B, input_dim), mu (B, zdim), logvar (B, zdim))
    """
    B, input_dim = x.shape
    zdim = eps.shape[1]
    hidden = params["w1"].shape[1]
    packed_dim = input_dim + 2 * zdim

    # --- fuse the mu/logvar heads once, in the wrapper (not per grid step) ---
    w2 = jnp.concatenate([params["w21"], params["w22"]], axis=1)  # (HIDDEN, 2*zdim)
    b2 = jnp.concatenate([params["b21"], params["b22"]], axis=1)  # (1, 2*zdim)

    # --- choose tile and pad the batch to a whole number of tiles ---
    tile_b = max(8, min(tile_b, _round_up(B, 8)))
    b_pad = _round_up(B, tile_b)
    if b_pad != B:
        x = jnp.pad(x, ((0, b_pad - B), (0, 0)))
        eps = jnp.pad(eps, ((0, b_pad - B), (0, 0)))
    grid = (b_pad // tile_b,)

    args = (
        x, eps,
        params["w1"], params["b1"],
        w2, b2,
        params["w3"], params["b3"],
        params["w4"], params["b4"],
    )

    # activations move with the grid; weights/biases are pinned (constant index_map)
    act_spec = lambda d: pl.BlockSpec((tile_b, d), lambda i: (i, 0))
    pin_spec = lambda s: pl.BlockSpec(s, lambda i: (0, 0))

    in_specs = [
        act_spec(input_dim),                 # x
        act_spec(zdim),                      # eps
        pin_spec(params["w1"].shape), pin_spec(params["b1"].shape),
        pin_spec(w2.shape),           pin_spec(b2.shape),
        pin_spec(params["w3"].shape), pin_spec(params["b3"].shape),
        pin_spec(params["w4"].shape), pin_spec(params["b4"].shape),
    ]
    out_spec = pl.BlockSpec((tile_b, packed_dim), lambda i: (i, 0))

    flops = 2 * b_pad * (input_dim * hidden + hidden * 2 * zdim
                         + zdim * hidden + hidden * input_dim)
    weight_bytes = sum(int(p.size) for p in (params["w1"], params["b1"], w2, b2,
                                             params["w3"], params["b3"],
                                             params["w4"], params["b4"])) * 4
    bytes_accessed = 4 * (b_pad * input_dim + b_pad * zdim
                          + b_pad * packed_dim) + weight_bytes

    packed = pl.pallas_call(
        _vae_kernel,
        out_shape=jax.ShapeDtypeStruct((b_pad, packed_dim), jnp.float32),
        grid=grid,
        in_specs=in_specs,
        out_specs=out_spec,
        compiler_params=pltpu.CompilerParams(
            dimension_semantics=("parallel",),
        ),
        cost_estimate=pl.CostEstimate(
            flops=flops,
            transcendentals=b_pad * zdim,
            bytes_accessed=bytes_accessed,
        ),
    )(*args)

    packed = packed[:B]
    recon = packed[:, :input_dim]
    mu = packed[:, input_dim:input_dim + zdim]
    logvar = packed[:, input_dim + zdim:]
    return recon, mu, logvar


def init_params(key, input_dim, zdim):
    """Deterministic synthetic init (shapes match the PyTorch module)."""
    ks = jax.random.split(key, 10)

    def lin(kw, kb, fan_in, fan_out):
        bound = 1.0 / jnp.sqrt(fan_in)
        w = jax.random.uniform(kw, (fan_in, fan_out), jnp.float32, -bound, bound)
        b = jax.random.uniform(kb, (1, fan_out), jnp.float32, -bound, bound)
        return w, b

    w1, b1 = lin(ks[0], ks[1], input_dim, HIDDEN)
    w21, b21 = lin(ks[2], ks[3], HIDDEN, zdim)
    w22, b22 = lin(ks[4], ks[5], HIDDEN, zdim)
    w3, b3 = lin(ks[6], ks[7], zdim, HIDDEN)
    w4, b4 = lin(ks[8], ks[9], HIDDEN, input_dim)
    return dict(w1=w1, b1=b1, w21=w21, b21=b21, w22=w22, b22=b22,
                w3=w3, b3=b3, w4=w4, b4=b4)


def vae_forward_ref(x, eps, p):
    """Pure-JAX reference mirroring the PyTorch forward (training mode)."""
    h1 = jnp.maximum(x @ p["w1"] + p["b1"], 0.0)
    mu = h1 @ p["w21"] + p["b21"]
    logvar = h1 @ p["w22"] + p["b22"]
    z = mu + eps * jnp.exp(0.5 * logvar)
    h3 = jnp.maximum(z @ p["w3"] + p["b3"], 0.0)
    recon = h3 @ p["w4"] + p["b4"]
    return recon, mu, logvar


if __name__ == "__main__":
    B = 64          # rows after x.view(-1, input_dim); "multi noisy input" rows
    INPUT_DIM = 32
    ZDIM = 8
    TILE_B = 16     # 4 grid steps at this small test size; use 256+ in production

    key = jax.random.PRNGKey(0)
    k_x, k_eps, k_p = jax.random.split(key, 3)

    x = jax.random.normal(k_x, (B, INPUT_DIM), jnp.float32)
    # eps = torch.randn(mu.size(0), mu.size(1)) equivalent, drawn once for determinism
    eps = jax.random.normal(k_eps, (B, ZDIM), jnp.float32)
    params = init_params(k_p, INPUT_DIM, ZDIM)

    recon, mu, logvar = vae_forward(x, eps, params, tile_b=TILE_B)
    jax.block_until_ready((recon, mu, logvar))

    r_ref, mu_ref, lv_ref = vae_forward_ref(x, eps, params)
    assert jnp.allclose(recon, r_ref, atol=1e-5, rtol=1e-5)
    assert jnp.allclose(mu, mu_ref, atol=1e-5, rtol=1e-5)
    assert jnp.allclose(logvar, lv_ref, atol=1e-5, rtol=1e-5)

    print("KERNEL_OK")
</pallas_src>

<mosaic_0001>
module attributes {stable_mosaic.version = 11 : i64} {
  func.func @_vae_kernel(%arg0: i32, %arg1: memref<16x32xf32, #tpu.memory_space<vmem>>, %arg2: memref<16x8xf32, #tpu.memory_space<vmem>>, %arg3: memref<32x20xf32, #tpu.memory_space<vmem>>, %arg4: memref<1x20xf32, #tpu.memory_space<vmem>>, %arg5: memref<20x16xf32, #tpu.memory_space<vmem>>, %arg6: memref<1x16xf32, #tpu.memory_space<vmem>>, %arg7: memref<8x20xf32, #tpu.memory_space<vmem>>, %arg8: memref<1x20xf32, #tpu.memory_space<vmem>>, %arg9: memref<20x32xf32, #tpu.memory_space<vmem>>, %arg10: memref<1x32xf32, #tpu.memory_space<vmem>>, %arg11: memref<16x48xf32, #tpu.memory_space<vmem>>) attributes {dimension_semantics = [#tpu.dimension_semantics<parallel>], iteration_bounds = array<i64: 4>, scalar_prefetch = 0 : i64, scratch_operands = 0 : i64, tpu.core_type = #tpu.core_type<tc>, window_params = [{transform_indices = @transform_0, window_bounds = array<i64: 16, 32>}, {transform_indices = @transform_1, window_bounds = array<i64: 16, 8>}, {pipeline_mode = #tpu.pipeline_mode<synchronous>, transform_indices = @transform_2, window_bounds = array<i64: 32, 20>}, {pipeline_mode = #tpu.pipeline_mode<synchronous>, transform_indices = @transform_3, window_bounds = array<i64: 1, 20>}, {pipeline_mode = #tpu.pipeline_mode<synchronous>, transform_indices = @transform_4, window_bounds = array<i64: 20, 16>}, {pipeline_mode = #tpu.pipeline_mode<synchronous>, transform_indices = @transform_5, window_bounds = array<i64: 1, 16>}, {pipeline_mode = #tpu.pipeline_mode<synchronous>, transform_indices = @transform_6, window_bounds = array<i64: 8, 20>}, {pipeline_mode = #tpu.pipeline_mode<synchronous>, transform_indices = @transform_7, window_bounds = array<i64: 1, 20>}, {pipeline_mode = #tpu.pipeline_mode<synchronous>, transform_indices = @transform_8, window_bounds = array<i64: 20, 32>}, {pipeline_mode = #tpu.pipeline_mode<synchronous>, transform_indices = @transform_9, window_bounds = array<i64: 1, 32>}, {transform_indices = @transform_10, window_bounds = array<i64: 16, 48>}]} {
    %c0 = arith.constant 0 : index
    %c0_0 = arith.constant 0 : index
    %0 = vector.load %arg1[%c0, %c0_0] : memref<16x32xf32, #tpu.memory_space<vmem>>, vector<16x32xf32>
    %c0_1 = arith.constant 0 : index
    %c0_2 = arith.constant 0 : index
    %1 = vector.load %arg3[%c0_1, %c0_2] : memref<32x20xf32, #tpu.memory_space<vmem>>, vector<32x20xf32>
    %cst = arith.constant dense<0.000000e+00> : vector<16x20xf32>
    %2 = tpu.matmul %0, %1, %cst {dimension_numbers = #tpu.dot_dimension_numbers<[1], [0], [0], [1], [0, 0, 1, 1], [], []>} : vector<16x32xf32>, vector<32x20xf32>, vector<16x20xf32> -> vector<16x20xf32>
    %c0_3 = arith.constant 0 : index
    %c0_4 = arith.constant 0 : index
    %3 = vector.load %arg4[%c0_3, %c0_4] : memref<1x20xf32, #tpu.memory_space<vmem>>, vector<1x20xf32>
    %4 = vector.broadcast %3 : vector<1x20xf32> to vector<16x20xf32>
    %5 = arith.addf %2, %4 : vector<16x20xf32>
    %cst_5 = arith.constant 0.000000e+00 : f32
    %6 = vector.broadcast %cst_5 : f32 to vector<16x20xf32>
    %7 = arith.maximumf %5, %6 : vector<16x20xf32>
    %c0_6 = arith.constant 0 : index
    %c0_7 = arith.constant 0 : index
    %8 = vector.load %arg5[%c0_6, %c0_7] : memref<20x16xf32, #tpu.memory_space<vmem>>, vector<20x16xf32>
    %cst_8 = arith.constant dense<0.000000e+00> : vector<16x16xf32>
    %9 = tpu.matmul %7, %8, %cst_8 {dimension_numbers = #tpu.dot_dimension_numbers<[1], [0], [0], [1], [0, 0, 1, 1], [], []>} : vector<16x20xf32>, vector<20x16xf32>, vector<16x16xf32> -> vector<16x16xf32>
    %c0_9 = arith.constant 0 : index
    %c0_10 = arith.constant 0 : index
    %10 = vector.load %arg6[%c0_9, %c0_10] : memref<1x16xf32, #tpu.memory_space<vmem>>, vector<1x16xf32>
    %11 = vector.broadcast %10 : vector<1x16xf32> to vector<16x16xf32>
    %12 = arith.addf %9, %11 : vector<16x16xf32>
    %13 = vector.extract_strided_slice %12 {offsets = [0, 0], sizes = [16, 8], strides = [1, 1]} : vector<16x16xf32> to vector<16x8xf32>
    %14 = vector.extract_strided_slice %12 {offsets = [0, 8], sizes = [16, 8], strides = [1, 1]} : vector<16x16xf32> to vector<16x8xf32>
    %cst_11 = arith.constant 5.000000e-01 : f32
    %15 = vector.broadcast %cst_11 : f32 to vector<16x8xf32>
    %16 = arith.mulf %15, %14 : vector<16x8xf32>
    %17 = math.exp %16 : vector<16x8xf32>
    %c0_12 = arith.constant 0 : index
    %c0_13 = arith.constant 0 : index
    %18 = vector.load %arg2[%c0_12, %c0_13] : memref<16x8xf32, #tpu.memory_space<vmem>>, vector<16x8xf32>
    %19 = arith.mulf %18, %17 : vector<16x8xf32>
    %20 = arith.addf %13, %19 : vector<16x8xf32>
    %c0_14 = arith.constant 0 : index
    %c0_15 = arith.constant 0 : index
    %21 = vector.load %arg7[%c0_14, %c0_15] : memref<8x20xf32, #tpu.memory_space<vmem>>, vector<8x20xf32>
    %cst_16 = arith.constant dense<0.000000e+00> : vector<16x20xf32>
    %22 = tpu.matmul %20, %21, %cst_16 {dimension_numbers = #tpu.dot_dimension_numbers<[1], [0], [0], [1], [0, 0, 1, 1], [], []>} : vector<16x8xf32>, vector<8x20xf32>, vector<16x20xf32> -> vector<16x20xf32>
    %c0_17 = arith.constant 0 : index
    %c0_18 = arith.constant 0 : index
    %23 = vector.load %arg8[%c0_17, %c0_18] : memref<1x20xf32, #tpu.memory_space<vmem>>, vector<1x20xf32>
    %24 = vector.broadcast %23 : vector<1x20xf32> to vector<16x20xf32>
    %25 = arith.addf %22, %24 : vector<16x20xf32>
    %cst_19 = arith.constant 0.000000e+00 : f32
    %26 = vector.broadcast %cst_19 : f32 to vector<16x20xf32>
    %27 = arith.maximumf %25, %26 : vector<16x20xf32>
    %c0_20 = arith.constant 0 : index
    %c0_21 = arith.constant 0 : index
    %28 = vector.load %arg9[%c0_20, %c0_21] : memref<20x32xf32, #tpu.memory_space<vmem>>, vector<20x32xf32>
    %cst_22 = arith.constant dense<0.000000e+00> : vector<16x32xf32>
    %29 = tpu.matmul %27, %28, %cst_22 {dimension_numbers = #tpu.dot_dimension_numbers<[1], [0], [0], [1], [0, 0, 1, 1], [], []>} : vector<16x20xf32>, vector<20x32xf32>, vector<16x32xf32> -> vector<16x32xf32>
    %c0_23 = arith.constant 0 : index
    %c0_24 = arith.constant 0 : index
    %30 = vector.load %arg10[%c0_23, %c0_24] : memref<1x32xf32, #tpu.memory_space<vmem>>, vector<1x32xf32>
    %31 = vector.broadcast %30 : vector<1x32xf32> to vector<16x32xf32>
    %32 = arith.addf %29, %31 : vector<16x32xf32>
    %33 = tpu.concatenate %32, %12 in 1 : vector<16x32xf32>, vector<16x16xf32> -> vector<16x48xf32>
    %c0_25 = arith.constant 0 : index
    %c0_26 = arith.constant 0 : index
    %34 = vector.load %arg11[%c0_25, %c0_26] : memref<16x48xf32, #tpu.memory_space<vmem>>, vector<16x48xf32>
    tpu.vector_store %arg11[%c0_25, %c0_26], %33 {strides = array<i32>} : memref<16x48xf32, #tpu.memory_space<vmem>>, vector<16x48xf32>,
    return
  }
  func.func @transform_0(%arg0: i32) -> (i32, i32) {
    %c0_i32 = arith.constant 0 : i32
    %c0_i32_0 = arith.constant 0 : i32
    return %arg0, %c0_i32 : i32, i32
  }
  func.func @transform_1(%arg0: i32) -> (i32, i32) {
    %c0_i32 = arith.constant 0 : i32
    %c0_i32_0 = arith.constant 0 : i32
    return %arg0, %c0_i32 : i32, i32
  }
  func.func @transform_2(%arg0: i32) -> (i32, i32) {
    %c0_i32 = arith.constant 0 : i32
    %c0_i32_0 = arith.constant 0 : i32
    %c0_i32_1 = arith.constant 0 : i32
    return %c0_i32, %c0_i32_0 : i32, i32
  }
  func.func @transform_3(%arg0: i32) -> (i32, i32) {
    %c0_i32 = arith.constant 0 : i32
    %c0_i32_0 = arith.constant 0 : i32
    %c0_i32_1 = arith.constant 0 : i32
    return %c0_i32, %c0_i32_0 : i32, i32
  }
  func.func @transform_4(%arg0: i32) -> (i32, i32) {
    %c0_i32 = arith.constant 0 : i32
    %c0_i32_0 = arith.constant 0 : i32
    %c0_i32_1 = arith.constant 0 : i32
    return %c0_i32, %c0_i32_0 : i32, i32
  }
  func.func @transform_5(%arg0: i32) -> (i32, i32) {
    %c0_i32 = arith.constant 0 : i32
    %c0_i32_0 = arith.constant 0 : i32
    %c0_i32_1 = arith.constant 0 : i32
    return %c0_i32, %c0_i32_0 : i32, i32
  }
  func.func @transform_6(%arg0: i32) -> (i32, i32) {
    %c0_i32 = arith.constant 0 : i32
    %c0_i32_0 = arith.constant 0 : i32
    %c0_i32_1 = arith.constant 0 : i32
    return %c0_i32, %c0_i32_0 : i32, i32
  }
  func.func @transform_7(%arg0: i32) -> (i32, i32) {
    %c0_i32 = arith.constant 0 : i32
    %c0_i32_0 = arith.constant 0 : i32
    %c0_i32_1 = arith.constant 0 : i32
    return %c0_i32, %c0_i32_0 : i32, i32
  }
  func.func @transform_8(%arg0: i32) -> (i32, i32) {
    %c0_i32 = arith.constant 0 : i32
    %c0_i32_0 = arith.constant 0 : i32
    %c0_i32_1 = arith.constant 0 : i32
    return %c0_i32, %c0_i32_0 : i32, i32
  }
  func.func @transform_9(%arg0: i32) -> (i32, i32) {
    %c0_i32 = arith.constant 0 : i32
    %c0_i32_0 = arith.constant 0 : i32
    %c0_i32_1 = arith.constant 0 : i32
    return %c0_i32, %c0_i32_0 : i32, i32
  }
  func.func @transform_10(%arg0: i32) -> (i32, i32) {
    %c0_i32 = arith.constant 0 : i32
    %c0_i32_0 = arith.constant 0 : i32
    return %arg0, %c0_i32 : i32, i32
  }
}

</mosaic_0001>

<bundles_post_ra>
// kernel: vae_forward.1
= control target key start
LH: loop header
LB: loop body
LE: loop exit
PB: predicated region body
PF: predicated region fallthrough
CT: control target
= control target key end

     0   :  { %s1040_s13 = smov 0   ;;  %s1122_s0 = inlined_call_operand.vmem [shape: f32[64,32], index: 0, kind: input, shape index: {}]   ;;  %s1123_s1 = inlined_call_operand.vmem [shape: f32[64,8], index: 1, kind: input, shape index: {}]   ;;  %s1124_s2 = inlined_call_operand.vmem [shape: f32[32,20], index: 2, kind: input, shape index: {}]   ;;  %s1125_s3 = inlined_call_operand.vmem [shape: f32[1,20], index: 3, kind: input, shape index: {}]   ;;  %s1126_s4 = inlined_call_operand.vmem [shape: f32[20,16], index: 4, kind: input, shape index: {}]   ;;  %s1127_s5 = inlined_call_operand.vmem [shape: f32[1,16], index: 5, kind: input, shape index: {}]   ;;  %s1128_s6 = inlined_call_operand.vmem [shape: f32[8,20], index: 6, kind: input, shape index: {}]   ;;  %s1129_s7 = inlined_call_operand.vmem [shape: f32[1,20], index: 7, kind: input, shape index: {}]   ;;  %s1130_s8 = inlined_call_operand.vmem [shape: f32[20,32], index: 8, kind: input, shape index: {}]   ;;  %s1131_s9 = inlined_call_operand.vmem [shape: f32[1,32], index: 9, kind: input, shape index: {}]   ;;  %s1132_s10 = inlined_call_operand.vmem [shape: f32[64,48], index: 10, kind: output, shape index: {}]  }
   0x1 LB: > { %s865_s14 = sadd.s32 4294967295, %s981_s13   ;;  %p869_p0 = scmp.ge.s32.totalorder %s981_s13, 1  ;;  %s981_s13 = sphi %s1040_s13, %s20_s13  }
   0x2   : > { %p324_p1 = scmp.lt.s32.totalorder %s981_s13, 5 }
   0x4   : > { %p325_p2 = pnand %p869_p0, %p324_p1 }
   0x5   : > { %v387_v0 = vld [vmem:[%s1124_s2] sm:$0xff] (!%p325_p2)  ;;  %v388_v1 = vld [vmem:[%s1124_s2 + $0x8] sm:$0xff] (!%p325_p2)  ;;  %v389_v2 = vld [vmem:[%s1124_s2 + $0x10] sm:$0xff] (!%p325_p2)  ;;  %s870_s21 = sshll.u32 (!%p325_p2), %s865_s14, 1  ;;  %vm398_vm0 = vcmask (!%p325_p2), 261120   ;;  %vm499_vm1 = vcmask (!%p325_p2), 1043456  }
   0x6   : > { %328 = sbr.rel (%p325_p2) target bundleno = 1024 (0x400), region = 60  ;;  %v945_v3 = vpack.c.bf16 (!%p325_p2), %v388_v1, %v387_v0  ;;  %v390_v4 = vld [vmem:[%s1124_s2 + $0x18] sm:$0xff] (!%p325_p2)  ;;  %p368_p3 = scmp.lt.s32.totalorder (!%p325_p2), %s870_s21, 7  ;;  %v482_v8 = vld [vmem:[%s1126_s4] sm:$0xff] (!%p325_p2)  ;;  %v483_v9 = vld [vmem:[%s1126_s4 + $0x8] sm:$0xff] (!%p325_p2)  ;;  %vm492_vm2 = vcmask (!%p325_p2), 162816  }
   0x7   : > { %v949_v5 = vpack.c.bf16 (!%p325_p2), %v390_v4, %v389_v2  ;;  %v953_v10 = vpack.c.bf16 (!%p325_p2), %v483_v9, %v482_v8  ;;  %v484_v11 = vld [vmem:[%s1126_s4 + $0x10] sm:$0xf] (!%p325_p2)  ;;  %v876_v12 = vld [vmem:[%s1125_s3] ss:$0 sm:$0xff] (!%p325_p2)  ;;  %s983_s19 = smov (!%p325_p2), 32   ;;  %s984_s22 = smov (!%p325_p2), 120  }
   0x8   : > { %946 = vmatprep.subr.bf16.mxu0 (!%p325_p2), %v945_v3  ;;  %v879_v19 = vld [vmem:[%s1127_s5] ss:$0 sm:$0xff] (!%p325_p2)  ;;  %vm606_vm3 = vcmask (!%p325_p2), 64512   ;;  %v691_v40 = vld [vmem:[%s1130_s8 + $0x8] sm:$0xff] (!%p325_p2)  ;;  %v692_v42 = vld [vmem:[%s1130_s8 + $0x10] sm:$0xf] (!%p325_p2) }
   0x9   : > { %948 = vmatpush3.bf16.msra.mxu0 (!%p325_p2), %v945_v3  ;;  %954 = vmatprep.subr.bf16.mxu1 (!%p325_p2), %v953_v10  ;;  %v598_v28 = vld [vmem:[%s1128_s6] sm:$0xff] (!%p325_p2)  ;;  %vm794_vm4 = vcmask (!%p325_p2), 392192  }
   0xa   : > { %950 = vmatprep.subr.bf16.mxu0 (!%p325_p2), %v949_v5  ;;  %956 = vmatpush3.bf16.msra.mxu1 (!%p325_p2), %v953_v10  ;;  %v690_v39 = vld [vmem:[%s1130_s8] sm:$0xff] (!%p325_p2) }
   0xb   : > { %926 = vmatprep.subr.msk.mxu1 (!%p325_p2), %vm499_vm1, %v484_v11  ;;  %v957_v41 = vpack.c.bf16 (!%p325_p2), %v691_v40, %v690_v39  ;;  %v883_v43 = vld [vmem:[%s1129_s7] ss:$0 sm:$0xff] (!%p325_p2) }
   0xc   : > { %v886_v51 = vld [vmem:[%s1131_s9] ss:$0 sm:$0xff] (!%p325_p2) }
   0xd   : > { %s1134_s21 = smov (!%p368_p3, %s870_s21), 7  ;;  %952 = vmatpush3.bf16.msra.mxu0 %v949_v5 }
   0xe   : > { %s1060_s24 = sshll.u32 %s1134_s21, 3  ;;  %927 = vmatpush3.msk.msra.mxu1 %vm499_vm1, %v484_v11  ;;  %958 = vmatprep.subr.bf16.mxu0 %v957_v41 }
   0xf   : > { %s371_s27 = scalar_lea.vmem %s1122_s0, %s1060_s24  ;;  %931 = vmatprep.subr.mxu1 %v598_v28  ;;  %s377_s26 = scalar_lea.vmem %s1123_s1, %s1060_s24 }
  0x10   : > { %v385_v6 = vld [vmem:[%s371_s27] sm:$0xff]  ;;  %v386_v7 = vld [vmem:[%s371_s27 + $0x8] sm:$0xff]  ;;  %s383_s20 = scalar_lea.vmem %s1132_s10, %s1060_s24 }
  0x11   : > { %919 = vmatprep.mubr.msk.f32.mxu0 %vm398_vm0, %v385_v6  ;;  %v584_v31 = vld [vmem:[%s377_s26] sm:$0xff]  ;;  %v585_v34 = vld [vmem:[%s377_s26 + $0x8] sm:$0xff] }
  0x12   : > { %920 = vmatmul.mubr.msk.f32.vlgmr.msra.gmra.mrb[0].mxu0 %vm398_vm0, %v386_v7 }
  0x13   : > { %960 = vmatpush3.bf16.msra.mxu0 %v957_v41 }
  0x14   : > { %940 = vmatprep.subr.msk.mxu0 %vm499_vm1, %v692_v42 }
  0x17   : > { %941 = vmatpush3.msk.msra.mxu0 %vm499_vm1, %v692_v42 }
  0xe5   : > { %v921_v13 = vpop.f32.mrb[0].mxu0 }
  0xe6   : > { %v477_v14 = vadd.f32 %v921_v13, %v876_v12  ;;  %v471_v15 = vpop.f32.mrb[1].mxu0 }
  0xe7   : > { %v472_v16 = vadd.f32 %v876_v12, %v471_v15 }
  0xe8   : > { %v481_v18 = vmax.f32 %v477_v14, 0.0 }
  0xe9   : > { %v480_v17 = vmax.f32 %v472_v16, 0.0 }
  0xeb   : > { %928 = vmatprep.mubr.msk.f32.mxu1 %vm492_vm2, %v480_v17 }
  0xec   : > { %929 = vmatmul.mubr.msk.f32.vlgmr.msra.gmra.mrb[0].mxu1 %vm492_vm2, %v481_v18 }
  0xed   : > { %932 = vmatpush3.msra.mxu1 %v598_v28 }
 0x1bf   : > { %v930_v20 = vpop.f32.mrb[0].mxu1 }
 0x1c0   : > { %v575_v21 = vadd.f32 %v930_v20, %v879_v19  ;;  %v569_v22 = vpop.f32.mrb[1].mxu1 }
 0x1c1   : > { %v570_v23 = vadd.f32 %v879_v19, %v569_v22 }
 0x1c2   : > { %v579_v24 = vmul.f32 0.5, %v575_v21 }
 0x1c3   : > { %v578_v25 = vmul.f32 0.5, %v570_v23  ;;  %786 = vrot.lane.b32.xlu1 %v570_v23, %s983_s19 }
 0x1c4   : > { %v582_v27 = vmul.f32 1.442695, %v579_v24 }
 0x1c5   : > { %v580_v26 = vmul.f32 1.442695, %v578_v25 }
 0x1c7   : > { %971 = vpow2.f32 %v580_v26  ;;  %788 = vrot.lane.b32.xlu1 %v575_v21, %s983_s19 }
 0x1c8   : > { %973 = vpow2.f32 %v582_v27 }
 0x1d1   : > { %v972_v29 = vpop.eup %971 }
 0x1d2   : > { %588 = vrot.lane.b32.xlu0 %v972_v29, %s984_s22  ;;  %v974_v30 = vpop.eup %973 }
 0x1d6   : > { %590 = vrot.lane.b32.xlu0 %v974_v30, %s984_s22 }
 0x235   : > { %v787_v50 = vpop.permute.xlu1 %786 }
 0x239   : > { %v789_v56 = vpop.permute.xlu1 %788 }
 0x244   : > { %v589_v32 = vpop.permute.xlu0 %588 }
 0x245   : > { %v594_v33 = vmul.f32 %v589_v32, %v584_v31 }
 0x247   : > { %v596_v35 = vadd.f32 %v594_v33, %v570_v23 }
 0x248   : > { %v591_v36 = vpop.permute.xlu0 %590 }
 0x249   : > { %v595_v37 = vmul.f32 %v591_v36, %v585_v34  ;;  %933 = vmatprep.mubr.msk.f32.mxu1 %vm606_vm3, %v596_v35 }
 0x24b   : > { %v597_v38 = vadd.f32 %v595_v37, %v575_v21 }
 0x24d   : > { %934 = vmatmul.mubr.msk.f32.vlgmr.msra.gmra.mrb[2].mxu1 %vm606_vm3, %v597_v38 }
 0x320   : > { %v935_v44 = vpop.f32.mrb[2].mxu1 }
 0x321   : > { %v685_v45 = vadd.f32 %v935_v44, %v883_v43  ;;  %v679_v46 = vpop.f32.mrb[3].mxu1 }
 0x322   : > { %v680_v47 = vadd.f32 %v883_v43, %v679_v46 }
 0x323   : > { %v689_v49 = vmax.f32 %v685_v45, 0.0 }
 0x324   : > { %v688_v48 = vmax.f32 %v680_v47, 0.0 }
 0x326   : > { %942 = vmatprep.mubr.msk.f32.mxu0 %vm492_vm2, %v688_v48 }
 0x327   : > { %943 = vmatmul.mubr.msk.f32.vlgmr.msra.gmra.mrb[2].mxu0 %vm492_vm2, %v689_v49 }
 0x3fa   : > { %v944_v52 = vpop.f32.mrb[2].mxu0 }
 0x3fb   : > { %v781_v53 = vadd.f32 %v944_v52, %v886_v51  ;;  %v775_v54 = vpop.f32.mrb[3].mxu0 }
 0x3fc   : > { %v776_v55 = vadd.f32 %v886_v51, %v775_v54 }
 0x3fd   : > { %v793_v58 = vsel %vm398_vm0, %v781_v53, %v789_v56 }
 0x3fe   : > { %v792_v57 = vsel %vm398_vm0, %v776_v55, %v787_v50  ;;  %796 = vst.msk [vmem:[%s383_s20 + $0x8] sm:$0xff] %vm794_vm4, %v793_v58 }
 0x3ff   : > { %795 = vst.msk [vmem:[%s383_s20] sm:$0xff] %vm794_vm4, %v792_v57 }
 0x400 PF: > { %s20_s13 = sadd.s32 1, %s981_s13  }
 0x401   : > { %p17_p4 = scmp.ge.s32.totalorder %s20_s13, 6  }
 0x403   :  { %19 = sbr.rel (!%p17_p4) target bundleno = 1 (0x1), region = 93 }

</bundles_post_ra>
